<compile_context>
chip_gen: v6e
topology: v6e:2x2x1
jax: 0.10.0
libtpu: 0.0.40
codegen_flags: <defaults>
</compile_context>

<pallas_src>
import functools

import jax
import jax.numpy as jnp
from jax.experimental import pallas as pl
from jax.experimental.pallas import tpu as pltpu


_NEG = -1e30  # finite "minus infinity" for masked (padded) vocab columns


def _train_kernel(ids_ref, tgt_ref, row_ref, logits_ref, loss_ref, *, vocab):
    # ids_ref, tgt_ref: (N,) int32 in SMEM (scalar prefetch).  ids only drive
    #   the table index_map (DMA gather), so they are unused in the body.
    # row_ref:    (1, 1, Vp) f32  -- gathered embedding row for this token.
    # logits_ref: (1, 1, Vp) f32 output block (lane-dense).
    # loss_ref:   (1, 1, 1)  f32 per-token NLL (mean taken in the wrapper).
    del ids_ref
    i = pl.program_id(0)
    vp = row_ref.shape[-1]

    # Logits output is just the gathered row (bit-exact embedding lookup).
    logits_ref[...] = row_ref[...]

    # Numerically stable per-token cross-entropy over the valid vocab lanes.
    row = row_ref[...].reshape(1, vp)
    col = jax.lax.broadcasted_iota(jnp.int32, (1, vp), 1)
    masked = jnp.where(col < vocab, row, _NEG)          # mask padded columns
    m = jnp.max(masked, axis=-1, keepdims=True)
    lse = m + jnp.log(jnp.sum(jnp.exp(masked - m), axis=-1, keepdims=True))

    tgt = tgt_ref[i]                                    # SMEM scalar read
    picked = jnp.sum(jnp.where(col == tgt, row, 0.0), axis=-1, keepdims=True)
    loss_ref[...] = (lse - picked).reshape(1, 1, 1)


def _infer_kernel(ids_ref, row_ref, logits_ref):
    # Inference path: DMA row gather only; kernel body is a single copy.
    del ids_ref
    logits_ref[...] = row_ref[...]


def bigram_forward(idx, table, targets=None):
    """Pallas equivalent of BigramLanguageModel.forward.

    idx:     (B, T) int32 token ids
    table:   (V, V) float32 embedding table
    targets: optional (B, T) int32 token ids
    Returns (logits, loss): logits is (B, T, V) if targets is None, else
    (B*T, V) (matching the PyTorch .view); loss is a scalar / None.
    """
    B, T = idx.shape
    V = table.shape[0]
    N = B * T
    Vp = ((V + 127) // 128) * 128                  # lane-dense class dim

    # Clamp ids: the DMA gather has no bounds check, so never let an
    # out-of-range id address outside the table.  Valid ids are unaffected.
    ids = jnp.clip(idx.reshape(N).astype(jnp.int32), 0, V - 1)

    # Zero-pad only the lane axis; the row axis becomes a leading (untiled)
    # dim of the 3-D view, so it needs no padding.  Padded columns are
    # masked inside the kernel.
    table_p = jnp.pad(table.astype(jnp.float32), ((0, 0), (0, Vp - V)))
    table_3d = table_p.reshape(V, 1, Vp)

    if targets is None:
        grid_spec = pltpu.PrefetchScalarGridSpec(
            num_scalar_prefetch=1,
            grid=(N,),
            in_specs=[
                # DMA row gather: block row index = prefetched token id.
                pl.BlockSpec((1, 1, Vp), lambda i, ids_r: (ids_r[i], 0, 0)),
            ],
            out_specs=pl.BlockSpec((1, 1, Vp), lambda i, ids_r: (i, 0, 0)),
        )
        logits_p = pl.pallas_call(
            _infer_kernel,
            out_shape=jax.ShapeDtypeStruct((N, 1, Vp), jnp.float32),
            grid_spec=grid_spec,
            compiler_params=pltpu.CompilerParams(
                dimension_semantics=("parallel",)),
        )(ids, table_3d)
        return logits_p.reshape(N, Vp)[:, :V].reshape(B, T, V), None

    tgt = targets.reshape(N).astype(jnp.int32)

    grid_spec = pltpu.PrefetchScalarGridSpec(
        num_scalar_prefetch=2,
        grid=(N,),
        in_specs=[
            pl.BlockSpec((1, 1, Vp), lambda i, ids_r, tgt_r: (ids_r[i], 0, 0)),
        ],
        out_specs=(
            pl.BlockSpec((1, 1, Vp), lambda i, ids_r, tgt_r: (i, 0, 0)),
            pl.BlockSpec((1, 1, 1), lambda i, ids_r, tgt_r: (i, 0, 0)),
        ),
    )
    logits_p, per_tok_loss = pl.pallas_call(
        functools.partial(_train_kernel, vocab=V),
        out_shape=(
            jax.ShapeDtypeStruct((N, 1, Vp), jnp.float32),
            jax.ShapeDtypeStruct((N, 1, 1), jnp.float32),
        ),
        grid_spec=grid_spec,
        compiler_params=pltpu.CompilerParams(
            dimension_semantics=("parallel",)),
    )(ids, tgt, table_3d)

    logits2d = logits_p.reshape(N, Vp)[:, :V]
    loss = jnp.mean(per_tok_loss)                  # mean over N tokens
    return logits2d, loss


# TODO(synk): generate() (autoregressive multinomial sampling loop) is
# host-side control flow + RNG sampling; not implemented as a Pallas kernel.


def _reference_forward(idx, table, targets):
    """Pure-JAX reference matching PyTorch semantics."""
    logits = table[idx]                       # (B, T, V)
    B, T, V = logits.shape
    logits2d = logits.reshape(B * T, V)
    tgt = targets.reshape(B * T)
    lse = jax.nn.logsumexp(logits2d, axis=-1)
    picked = jnp.take_along_axis(logits2d, tgt[:, None], axis=-1)[:, 0]
    loss = jnp.mean(lse - picked)
    return logits2d, loss


if __name__ == "__main__":
    vocab_size = 65   # e.g. tiny-shakespeare char vocab
    B, T = 2, 8

    key = jax.random.PRNGKey(0)
    k_tab, k_idx, k_tgt = jax.random.split(key, 3)

    # nn.Embedding default init: N(0, 1)
    table = jax.random.normal(k_tab, (vocab_size, vocab_size), dtype=jnp.float32)
    idx = jax.random.randint(k_idx, (B, T), 0, vocab_size, dtype=jnp.int32)
    targets = jax.random.randint(k_tgt, (B, T), 0, vocab_size, dtype=jnp.int32)

    logits, loss = bigram_forward(idx, table, targets)
    logits = jax.block_until_ready(logits)
    loss = jax.block_until_ready(loss)

    ref_logits, ref_loss = _reference_forward(idx, table, targets)
    assert logits.shape == (B * T, vocab_size)
    assert jnp.allclose(logits, ref_logits, atol=1e-5, rtol=1e-5)
    assert jnp.allclose(loss, ref_loss, atol=1e-5, rtol=1e-5)

    # Also exercise the targets=None path (inference-style call).
    logits_inf, loss_inf = bigram_forward(idx, table, None)
    logits_inf = jax.block_until_ready(logits_inf)
    assert logits_inf.shape == (B, T, vocab_size) and loss_inf is None
    assert jnp.allclose(logits_inf.reshape(B * T, vocab_size), ref_logits,
                        atol=1e-5, rtol=1e-5)

    print("KERNEL_OK")
</pallas_src>

<mosaic_0001>
module attributes {stable_mosaic.version = 11 : i64} {
  func.func @_train_kernel(%arg0: i32, %arg1: memref<16xi32, #tpu.memory_space<smem>>, %arg2: memref<16xi32, #tpu.memory_space<smem>>, %arg3: memref<1x1x128xf32, #tpu.memory_space<vmem>>, %arg4: memref<1x1x128xf32, #tpu.memory_space<vmem>>, %arg5: memref<1x1x1xf32, #tpu.memory_space<vmem>>) attributes {dimension_semantics = [#tpu.dimension_semantics<parallel>], iteration_bounds = array<i64: 16>, scalar_prefetch = 2 : i64, scratch_operands = 0 : i64, tpu.core_type = #tpu.core_type<tc>, window_params = [{transform_indices = @transform_0, window_bounds = array<i64: 1, 1, 128>}, {transform_indices = @transform_1, window_bounds = array<i64: 1, 1, 128>}, {transform_indices = @transform_2, window_bounds = array<i64: 1, 1, 1>}]} {
    %c0 = arith.constant 0 : index
    %c0_0 = arith.constant 0 : index
    %c0_1 = arith.constant 0 : index
    %0 = vector.load %arg3[%c0, %c0_0, %c0_1] : memref<1x1x128xf32, #tpu.memory_space<vmem>>, vector<1x1x128xf32>
    %c0_2 = arith.constant 0 : index
    %c0_3 = arith.constant 0 : index
    %c0_4 = arith.constant 0 : index
    %1 = vector.load %arg4[%c0_2, %c0_3, %c0_4] : memref<1x1x128xf32, #tpu.memory_space<vmem>>, vector<1x1x128xf32>
    tpu.vector_store %arg4[%c0_2, %c0_3, %c0_4], %0 {strides = array<i32>} : memref<1x1x128xf32, #tpu.memory_space<vmem>>, vector<1x1x128xf32>,
    %c0_5 = arith.constant 0 : index
    %c0_6 = arith.constant 0 : index
    %c0_7 = arith.constant 0 : index
    %2 = vector.load %arg3[%c0_5, %c0_6, %c0_7] : memref<1x1x128xf32, #tpu.memory_space<vmem>>, vector<1x1x128xf32>
    %3 = vector.shape_cast %2 : vector<1x1x128xf32> to vector<1x128xf32>
    %4 = tpu.iota {dimensions = array<i32: 1>} : vector<1x128xi32>
    %c65_i32 = arith.constant 65 : i32
    %5 = vector.broadcast %c65_i32 : i32 to vector<1x128xi32>
    %6 = arith.cmpi slt, %4, %5 : vector<1x128xi32>
    %cst = arith.constant -1.000000e+30 : f32
    %7 = vector.broadcast %cst : f32 to vector<1x128xf32>
    %8 = arith.select %6, %3, %7 : vector<1x128xi1>, vector<1x128xf32>
    %cst_8 = arith.constant dense<0xFF800000> : vector<1xf32>
    %9 = vector.multi_reduction <maximumf>, %8, %cst_8 [1] : vector<1x128xf32> to vector<1xf32>
    %10 = vector.shape_cast %9 : vector<1xf32> to vector<1x1xf32>
    %11 = vector.broadcast %10 : vector<1x1xf32> to vector<1x128xf32>
    %12 = arith.subf %8, %11 : vector<1x128xf32>
    %13 = math.exp %12 : vector<1x128xf32>
    %cst_9 = arith.constant dense<0.000000e+00> : vector<1xf32>
    %14 = vector.multi_reduction <add>, %13, %cst_9 [1] : vector<1x128xf32> to vector<1xf32>
    %15 = vector.shape_cast %14 : vector<1xf32> to vector<1x1xf32>
    %16 = math.log %15 : vector<1x1xf32>
    %17 = arith.addf %10, %16 : vector<1x1xf32>
    %18 = arith.index_cast %arg0 : i32 to index
    %19 = memref.load %arg2[%18] : memref<16xi32, #tpu.memory_space<smem>>
    %20 = vector.broadcast %19 : i32 to vector<1x128xi32>
    %21 = arith.cmpi eq, %4, %20 : vector<1x128xi32>
    %cst_10 = arith.constant 0.000000e+00 : f32
    %22 = vector.broadcast %cst_10 : f32 to vector<1x128xf32>
    %23 = arith.select %21, %3, %22 : vector<1x128xi1>, vector<1x128xf32>
    %cst_11 = arith.constant dense<0.000000e+00> : vector<1xf32>
    %24 = vector.multi_reduction <add>, %23, %cst_11 [1] : vector<1x128xf32> to vector<1xf32>
    %25 = vector.shape_cast %24 : vector<1xf32> to vector<1x1xf32>
    %26 = arith.subf %17, %25 : vector<1x1xf32>
    %27 = vector.shape_cast %26 : vector<1x1xf32> to vector<1x1x1xf32>
    %c0_12 = arith.constant 0 : index
    %c0_13 = arith.constant 0 : index
    %c0_14 = arith.constant 0 : index
    %28 = vector.load %arg5[%c0_12, %c0_13, %c0_14] : memref<1x1x1xf32, #tpu.memory_space<vmem>>, vector<1x1x1xf32>
    tpu.vector_store %arg5[%c0_12, %c0_13, %c0_14], %27 {strides = array<i32>} : memref<1x1x1xf32, #tpu.memory_space<vmem>>, vector<1x1x1xf32>,
    return
  }
  func.func @transform_0(%arg0: i32, %arg1: memref<16xi32, #tpu.memory_space<smem>>, %arg2: memref<16xi32, #tpu.memory_space<smem>>) -> (i32, i32, i32) {
    %0 = arith.index_cast %arg0 : i32 to index
    %1 = memref.load %arg1[%0] : memref<16xi32, #tpu.memory_space<smem>>
    %c0_i32 = arith.constant 0 : i32
    %c0_i32_0 = arith.constant 0 : i32
    %c0_i32_1 = arith.constant 0 : i32
    return %1, %c0_i32, %c0_i32_0 : i32, i32, i32
  }
  func.func @transform_1(%arg0: i32, %arg1: memref<16xi32, #tpu.memory_space<smem>>, %arg2: memref<16xi32, #tpu.memory_space<smem>>) -> (i32, i32, i32) {
    %c0_i32 = arith.constant 0 : i32
    %c0_i32_0 = arith.constant 0 : i32
    %c0_i32_1 = arith.constant 0 : i32
    return %arg0, %c0_i32, %c0_i32_0 : i32, i32, i32
  }
  func.func @transform_2(%arg0: i32, %arg1: memref<16xi32, #tpu.memory_space<smem>>, %arg2: memref<16xi32, #tpu.memory_space<smem>>) -> (i32, i32, i32) {
    %c0_i32 = arith.constant 0 : i32
    %c0_i32_0 = arith.constant 0 : i32
    %c0_i32_1 = arith.constant 0 : i32
    return %arg0, %c0_i32, %c0_i32_0 : i32, i32, i32
  }
}

</mosaic_0001>

<bundles_post_ra>
// kernel: tpu_custom_call.1
= control target key start
LH: loop header
LB: loop body
LE: loop exit
PB: predicated region body
PF: predicated region fallthrough
CT: control target
= control target key end

     0   :  { %s537_s15 = smov [#allocation3]   ;;  %s747_s0 = inlined_call_operand.hbm [shape: s32[16], index: 0, kind: input, shape index: {}]   ;;  %s748_s2 = inlined_call_operand.hbm [shape: f32[65,1,128], index: 2, kind: input, shape index: {}]   ;;  %s749_s3 = inlined_call_operand.hbm [shape: f32[16,1,128], index: 3, kind: output, shape index: {0}]   ;;  %s750_s4 = inlined_call_operand.vmem [shape: f32[16,1,1], index: 4, kind: output, shape index: {1}]   ;;  %s751_s1 = inlined_call_operand.vmem [shape: s32[16], index: 1, kind: input, shape index: {}]  }
   0x1   :  { %11 = dma.hbm_to_smem %s747_s0, 16, %s537_s15, [#allocation2] }
   0x2   :  { %s12_s20 = sshll.u32 %s751_s1, 4  ;;  %s13_s20 = int_to_ptr.vmem [resolvable:$true] %s12_s20 }
   0x3   :  { %s405_s21 = scalar_lea.vmem %s13_s20, 16  ;;  %p410_p1 = scmp.lt.s32.totalorder %s13_s20, %s13_s20 }
   0x4   :  { %p406_p0 = scmp.ne.s32.totalorder %s13_s20, %s405_s21  ;;  %p411_p2 = scmp.lt.s32.totalorder %s405_s21, %s405_s21 }
   0x6   :  { %p412_p3 = por %p411_p2, %p410_p1 }
   0x8   :  { %p413_p4 = pnand %p412_p3, %p406_p0 }
   0xa   :  { %416 = shalt.err (!%p413_p4)  }
   0xb   :  { %s538_s22 = smov [#allocation4]  }
   0xc   :  { %15 = dma.vmem_to_smem %s13_s20, 16, %s538_s22, [#allocation2] }
   0xd   :  { %499 = dma.done.wait [#allocation2], 32 }
   0xe   :  { %500 = vsyncadd [#allocation2], 4294967264 }
   0xf   :  { %17 = sfence }
  0x10   :  { %18 = vsyncpa [#allocation6], 0 }
  0x11   :  { %20 = vsyncpa [#allocation6 + $0x1], 0 }
  0x12   :  { %21 = vsyncpa [#allocation7], 0 }
  0x13   :  { %23 = vsyncpa [#allocation7 + $0x1], 0  ;;  %s572_s0 = smov 0   ;;  %s574_s1 = smov 0  }
  0x14   :  { %s576_s23 = smov 0   ;;  %s578_s24 = smov 0  }
  0x15   :  { %s580_s25 = smov 0   ;;  %s582_s26 = smov 0  }
  0x16   :  { %s584_s27 = smov 0  }
  0x17 LB: > { %s606_s28 = sadd.s32 4294967295, %s535_s27   ;;  %s309_s29 = sadd.s32 4294967294, %s535_s27   ;;  %s535_s27 = sphi %s584_s27, %s772_s27   ;;  %s531_s26 = sphi %s582_s26, %s771_s26   ;;  %s527_s25 = sphi %s580_s25, %s770_s25   ;;  %s523_s24 = sphi %s578_s24, %s769_s24   ;;  %s519_s23 = sphi %s576_s23, %s768_s23   ;;  %s515_s1 = sphi %s574_s1, %s767_s1   ;;  %s511_s0 = sphi %s572_s0, %s766_s0  }
  0x18   : > { %s610_s30 = sadd.s32 1, %s535_s27   ;;  %s33_s5 = sld [smem:[#allocation3 + %s535_s27]] }
  0x19   : > { %s34_s6 = sld [smem:[#allocation3 + %s610_s30]]  ;;  %s38_s7 = sadd.s32 1, %s531_s26 }
  0x1a   : > { %p45_p5 = scmp.ne.s32.totalorder %s531_s26, %s527_s25  ;;  %p46_p6 = scmp.eq.s32.totalorder %s535_s27, 0 }
  0x1b   : > { %p51_p7 = scmp.ne.s32.totalorder %s527_s25, %s523_s24  ;;  %p52_p8 = scmp.eq.s32.totalorder %s606_s28, 0 }
  0x1c   : > { %p620_p9 = por %p46_p6, %p45_p5  ;;  %s61_s9 = ssub.s32 %s535_s27, %s610_s30 }
  0x1d   : > { %p626_p10 = por %p52_p8, %p51_p7  ;;  %p62_p11 = scmp.eq.s32.totalorder %s61_s9, 0 }
  0x1e   : > { %s64_s11 = sadd.s32 1, %s519_s23  ;;  %p74_p12 = scmp.ne.s32.totalorder %s519_s23, %s515_s1 }
  0x1f   : > { %s755_s10 = scalar_select %p626_p10, 1, 0 }
  0x20   : > { %s35_s12 = ssub.s32 %s33_s5, %s34_s6  ;;  %p75_p13 = scmp.eq.s32.totalorder %s606_s28, 15 }
  0x21   : > { %p36_p0 = scmp.eq.s32.totalorder %s35_s12, 0  ;;  %p80_p1 = scmp.ne.s32.totalorder %s515_s1, %s511_s0 }
  0x22   : > { %s637_s13 = scalar_select %p62_p11, %s519_s23, %s64_s11  }
  0x23   : > { %s640_s14 = scalar_select %p36_p0, %s531_s26, %s38_s7  }
  0x24   : > { %p642_p2 = por %p75_p13, %p74_p12  ;;  %p81_p3 = scmp.eq.s32.totalorder %s309_s29, 15 }
  0x25   : > { %756 = sst [smem:[#allocation14_spill]] %s640_s14  ;;  %p333_p5 = scmp.lt.s32.totalorder %s535_s27, 16 }
  0x26   : > { %s757_s15 = scalar_select %p642_p2, 1, 0 }
  0x27   : > { %p646_p4 = por %p81_p3, %p80_p1  ;;  %s127_s17 = sand.u32 1, %s531_s26  }
  0x28   : > { %s317_s18 = scalar_select %p620_p9, [#allocation3], [#allocation9] }
  0x29   : > { %s758_s16 = scalar_select %p646_p4, 1, 0 }
  0x2a   : > { %s318_s19 = scalar_select %p620_p9, %s535_s27, 0 }
  0x2b   : > { %s774_s18 = smov (!%p333_p5, %s317_s18), [#allocation10]  ;;  %p659_p6 = pnand %p333_p5, %p620_p9 }
  0x2c   : > { %s776_s19 = smov (!%p333_p5, %s318_s19), 0  ;;  %p313_p7 = scmp.ge.s32.totalorder %s535_s27, 1 }
  0x2d   : > { %s131_s21 = sld [smem:[%s774_s18 + %s776_s19]]  ;;  %s130_s22 = scalar_lea.vmem [#allocation5], %s127_s17 }
  0x2e   : > { %s138_s24 = sshll.u32 %s130_s22, 4  ;;  %p143_p8 = scmp.lt.s32.totalorder %s535_s27, 17  ;;  %s669_s24 = int_to_ptr.vmem [resolvable:$true] %s138_s24 }
  0x2f   : > { %s128_s9 = scalar_lea.sflag [#allocation6], %s127_s17  ;;  %p419_p12 = pneg %p659_p6 }
  0x30   : > { %p665_p11 = pnand %p313_p7, %p143_p8  ;;  %s422_s19 = scalar_lea.hbm %s748_s2, 1040 }
  0x32   : > { %s760_s29 = scalar_select %p665_p11, 1, 0 }
  0x33   : > { %s312_s5 = sshll.u32 %s131_s21, 4 }
  0x34   : > { %s136_s8 = scalar_lea.hbm %s748_s2, %s312_s5 }
  0x35   : > { %s417_s11 = scalar_lea.hbm %s136_s8, 16  ;;  %p423_p1 = scmp.lt.s32.totalorder %s136_s8, %s748_s2 }
  0x36   : > { %p418_p9 = scmp.ne.s32.totalorder %s136_s8, %s417_s11  ;;  %p424_p3 = scmp.lt.s32.totalorder %s422_s19, %s417_s11 }
  0x38   : > { %p420_p13 = pnand %p419_p12, %p418_p9  ;;  %p425_p5 = por %p424_p3, %p423_p1 }
  0x3a   : > { %p421_p0 = pneg %p420_p13 }
  0x3c   : > { %p426_p7 = pnand %p425_p5, %p421_p0 }
  0x3e   : > { %429 = shalt.err (!%p426_p7)
}
  0x3f   : > { %s430_s17 = scalar_lea.vmem %s669_s24, 16  ;;  %s539_s21 = smov [#allocation5]  }
  0x40   : > { %p431_p8 = scmp.ne.s32.totalorder %s669_s24, %s430_s17  ;;  %s435_s5 = sshll.u32 %s539_s21, 4  ;;  %s436_s5 = int_to_ptr.vmem [resolvable:$false] %s435_s5 }
  0x41   : > { %s437_s6 = scalar_lea.vmem %s436_s5, 32  ;;  %p438_p13 = scmp.lt.s32.totalorder %s669_s24, %s436_s5 }
  0x42   : > { %p433_p4 = pnand %p431_p8, %p419_p12  ;;  %p439_p2 = scmp.lt.s32.totalorder %s437_s6, %s430_s17 }
  0x44   : > { %p434_p9 = pneg %p433_p4  ;;  %p440_p10 = por %p439_p2, %p438_p13 }
  0x46   : > { %p441_p11 = pnand %p440_p10, %p434_p9 }
  0x48   : > { %444 = shalt.err (!%p441_p11)
}
  0x49   : > { %328 = dma.hbm_to_vmem [thread:$0]  (!%p659_p6), %s136_s8, 16, %s669_s24, %s128_s9  }
  0x4a   : > { %p761_p0 = scmp.ne.s32.totalorder %s760_s29, 0 }
  0x4b   : > { %s149_s14 = sand.u32 (!%p761_p0), 1, %s527_s25   ;;  %p762_p4 = scmp.ne.s32.totalorder (!%p761_p0), %s755_s10, 0 }
  0x4c   : > { %147 = sbr.rel (%p761_p0) target bundleno = 405 (0x195), region = 24  ;;  %s150_s7 = scalar_lea.sflag (!%p761_p0), [#allocation6], %s149_s14 }
  0x4d   : > { %s152_s11 = scalar_lea.vmem (!%p761_p0), [#allocation5], %s149_s14 }
  0x51   : > { %502 = dma.done.wait (%p762_p4), %s150_s7, 16  }
  0x52   : > { %504 = vsyncadd (%p762_p4), %s150_s7, 4294967280  ;;  %v181_v0 = vlaneseq  ;;  %vm185_vm1 = vcmask 1040384   ;;  %v180_v2 = vld [vmem:[%s152_s11] sm:$0x1]  ;;  %s198_s20 = sld [smem:[#allocation4 + %s606_s28]]  ;;  %s167_s10 = sand.u32 1, %s515_s1  }
  0x53   : > { %v178_v13 = vld [vmem:[%s152_s11] sm:$0x1]  ;;  %s168_s24 = scalar_lea.vmem [#allocation8], %s167_s10  ;;  %s314_s29 = sshll.u32 %s606_s28, 4 }
  0x54   : > { %v182_v1 = vand.u32 127, %v181_v0  ;;  %179 = vst [vmem:[%s168_s24] sm:$0x1] %v178_v13  ;;  %s222_s12 = scalar_lea.hbm %s749_s3, %s314_s29  ;;  %s224_s18 = sshll.u32 %s168_s24, 4  ;;  %s225_s18 = int_to_ptr.vmem [resolvable:$true] %s224_s18 }
  0x55   : > { %s209_s19 = scalar_lea.sflag [#allocation7], %s167_s10  ;;  %s445_s22 = scalar_lea.vmem %s225_s18, 16 }
  0x56   : > { %vm183_vm0 = vcmp.lt.s32.totalorder %v182_v1, 65  ;;  %p446_p10 = scmp.ne.s32.totalorder %s225_s18, %s445_s22  ;;  %p763_p2 = scmp.ne.s32.totalorder %s757_s15, 0 }
  0x57   : > { %v184_v3 = vsel %vm183_vm0, %v180_v2, -1e+30  ;;  %s540_s17 = smov [#allocation8]  }
  0x58   : > { %v186_v4 = vsel %vm185_vm1, %v184_v3, -inf  ;;  %v199_v5 = vstv %s198_s20  ;;  %p447_p6 = pnand %p446_p10, %p763_p2  ;;  %s449_s21 = sshll.u32 %s540_s17, 4  ;;  %s450_s21 = int_to_ptr.vmem [resolvable:$false] %s449_s21 }
  0x59   : > { %187 = vmax.xlane.f32.xlu0 %v186_v4  ;;  %vm200_vm2 = vcmp.eq.s32.totalorder %v182_v1, %v199_v5  ;;  %s451_s5 = scalar_lea.vmem %s450_s21, 32  ;;  %p452_p12 = scmp.lt.s32.totalorder %s225_s18, %s450_s21 }
  0x5a   : > { %v201_v6 = vsel %vm200_vm2, %v180_v2, 0.0  ;;  %p448_p11 = pneg %p447_p6  ;;  %p453_p1 = scmp.lt.s32.totalorder %s451_s5, %s445_s22 }
  0x5b   : > { %v202_v7 = vsel %vm185_vm1, %v201_v6, 0.0 }
  0x5c   : > { %203 = vadd.xlane.f32.xlu1 %v202_v7  ;;  %p454_p3 = por %p453_p1, %p452_p12 }
  0x5e   : > { %p455_p5 = pnand %p454_p3, %p448_p11 }
  0xe2   : > { %v188_v8 = vpop.xlane.xlu0 %187 }
  0xe3   : > { %v189_v9 = vsub.f32 %v184_v3, %v188_v8 }
  0xe5   : > { %v190_v10 = vmul.f32 1.442695, %v189_v9 }
  0xe7   : > { %393 = vpow2.f32 %v190_v10 }
  0xf4   : > { %v394_v11 = vpop.eup %393 }
  0xf5   : > { %v192_v12 = vsel %vm185_vm1, %v394_v11, 0.0 }
  0xf6   : > { %193 = vadd.xlane.f32.xlu0 %v192_v12 }
  0xf7   : > { %458 = shalt.err (!%p455_p5)
}
  0xf8   : > { %s459_s6 = scalar_lea.hbm %s222_s12, 16  ;;  %s463_s11 = scalar_lea.hbm %s749_s3, 256 }
  0xf9   : > { %p460_p7 = scmp.ne.s32.totalorder %s222_s12, %s459_s6  ;;  %p464_p13 = scmp.lt.s32.totalorder %s222_s12, %s749_s3 }
  0xfa   : > { %p465_p0 = scmp.lt.s32.totalorder %s463_s11, %s459_s6 }
  0xfb   : > { %p461_p8 = pnand %p460_p7, %p763_p2 }
  0xfc   : > { %p466_p4 = por %p465_p0, %p464_p13 }
  0xfd   : > { %p462_p9 = pneg %p461_p8 }
  0xff   : > { %p467_p10 = pnand %p466_p4, %p462_p9 }
 0x101   : > { %470 = shalt.err (!%p467_p10)
}
 0x102   : > { %321 = dma.vmem_to_hbm [thread:$0]  (%p763_p2), %s225_s18, 16, %s222_s12, %s209_s19   ;;  %v204_v17 = vpop.xlane.xlu1 %203  ;;  %vm206_vm3 = vcmask 0  }
 0x103   : > { %p175_p6 = scmp.lt.s32.totalorder %s606_s28, 15 }
 0x105   : > { %s778_s28 = smov (!%p175_p6, %s606_s28), 15 }
 0x106   : > { %s177_s8 = scalar_lea.vmem %s750_s4, %s778_s28 }
 0x17f   : > { %v194_v14 = vpop.xlane.xlu0 %193 }
 0x180   : > { %395 = vlog2.f32 %v194_v14 }
 0x18d   : > { %v396_v15 = vpop.eup %395 }
 0x18e   : > { %v196_v16 = vmul.f32 0.6931472, %v396_v15 }
 0x190   : > { %v197_v18 = vadd.f32 %v196_v16, %v188_v8 }
 0x192   : > { %v205_v19 = vsub.f32 %v197_v18, %v204_v17 }
 0x194   : > { %207 = vst.msk [vmem:[%s177_s8] sm:$0x1] %vm206_vm3, %v205_v19 }
 0x195 PF: > { %p334_p2 = scmp.ge.s32.totalorder %s535_s27, 2  ;;  %s239_s15 = sand.u32 1, %s511_s0  }
 0x196   : > { %p764_p11 = scmp.ne.s32.totalorder %s758_s16, 0  ;;  %s240_s9 = scalar_lea.sflag [#allocation7], %s239_s15 }
 0x198   : > { %p330_p12 = pnand %p334_p2, %p764_p11 }
 0x19a   : > { %p331_p1 = pneg %p330_p12 }
 0x19c   : > { %506 = dma.done.wait (%p331_p1), %s240_s9, 16  }
 0x19d   : > { %508 = vsyncadd (%p331_p1), %s240_s9, 4294967280  ;;  %s765_s28 = sld [smem:[#allocation14_spill]]  ;;  %p26_p3 = scmp.ge.s32.totalorder %s610_s30, 18  }
 0x19e   : > { %s766_s0 = smov %s515_s1  ;;  %s767_s1 = smov %s519_s23 }
 0x19f   : > { %s768_s23 = smov %s637_s13  ;;  %s769_s24 = smov %s527_s25 }
 0x1a0   : > { %s770_s25 = smov %s531_s26  ;;  %s772_s27 = smov %s610_s30 }
 0x1a1   :  { %28 = sbr.rel (!%p26_p3) target bundleno = 23 (0x17), region = 81 }
 0x1a3   : > { %s771_s26 = smov %s765_s28 }
 0x1a6   :  { %250 = vsyncpa [#allocation6], 1 }
 0x1a7   :  { %252 = vsyncpa [#allocation6 + $0x1], 1 }
 0x1a8   :  { %253 = vsyncpa [#allocation7], 1 }
 0x1a9   :  { %255 = vsyncpa [#allocation7 + $0x1], 1 }

</bundles_post_ra>
